<compile_context>
chip_gen: v7x
topology: tpu7x:2x2x1
jax: 0.10.0
libtpu: 0.0.40
codegen_flags: <defaults>
</compile_context>

<pallas_src>
import jax
import jax.numpy as jnp
from jax.experimental import pallas as pl
from jax.experimental.pallas import tpu as pltpu


def search_kernel(z_ref, w1_ref, b1_ref, w2_ref, b2_ref, wf_ref, bf_ref,
                  dz_ref, o_ref):
    # One (feat, tile_b) batch tile per grid step; batch is the lane axis.
    z = z_ref[...]                                               # [ninput, tb]

    # layer1 + ReLU
    h = jnp.dot(w1_ref[...], z, preferred_element_type=jnp.float32) + b1_ref[...]
    h = jnp.maximum(h, 0.0)                                      # [h1, tb]

    # layer2 + ReLU
    h = jnp.dot(w2_ref[...], h, preferred_element_type=jnp.float32) + b2_ref[...]
    h = jnp.maximum(h, 0.0)                                      # [h2, tb]

    # final linear to noutput
    out = jnp.dot(wf_ref[...], h, preferred_element_type=jnp.float32) + bf_ref[...]
    # out: [noutput, tb]

    # per-column (= per batch row) L2 normalization over the feature axis.
    # NOTE: no epsilon -> matches the PyTorch reference (div by exact norm).
    inv_norm = jax.lax.rsqrt(jnp.sum(out * out, axis=0, keepdims=True))  # [1, tb]

    # fold delta_z and 1/||.|| into a single per-column scale (one VPU pass).
    scale = dz_ref[...] * inv_norm                                # [1, tb]
    o_ref[...] = (out * scale).astype(o_ref.dtype)


def _choose_tile_b(B, requested):
    """Pick a lane-aligned batch tile that divides B exactly (no padding).

    Prefers a multiple of 128 giving an even number of tiles (>=2) so both
    v7x TensorCores get equal work; falls back to a single full block.
    """
    if B < 256 or B % 128 != 0:
        return B  # single full block (block last-dim == full array dim is legal)
    t = (min(requested, B) // 128) * 128
    # First pass: even number of tiles.
    cand = t
    while cand >= 128:
        if B % cand == 0 and (B // cand) % 2 == 0:
            return cand
        cand -= 128
    # Second pass: any multiple-of-128 divisor.
    cand = t
    while cand >= 128:
        if B % cand == 0:
            return cand
        cand -= 128
    return B


def search_forward(z, params, delta_z, tile_b=4096):
    """z: [B, ninput] f32, delta_z: [B, 1] f32, params: dict of [out,in] weights."""
    w1, b1, w2, b2, wf, bf = (params["w1"], params["b1"], params["w2"],
                              params["b2"], params["wf"], params["bf"])
    B, ninput = z.shape
    h1 = w1.shape[0]
    h2 = w2.shape[0]
    noutput = wf.shape[0]

    tile_b = _choose_tile_b(B, tile_b)
    n_tiles = B // tile_b

    # Lane-dense layout: batch becomes the last (128-lane) axis.
    zT = z.T                      # [ninput, B]
    dzT = delta_z.T               # [1, B]

    # Advisory cost estimate for XLA scheduling around the custom call.
    flops = 2 * B * (ninput * h1 + h1 * h2 + h2 * noutput)
    weight_bytes = 4 * (ninput * h1 + h1 + h1 * h2 + h2 + h2 * noutput + noutput)
    bytes_accessed = 4 * B * (ninput + noutput + 1) + weight_bytes
    cost = pl.CostEstimate(flops=flops, transcendentals=B,
                           bytes_accessed=bytes_accessed)

    def stream_spec(feat):
        # Streamed along the batch grid axis (batch = lane axis).
        return pl.BlockSpec((feat, tile_b), lambda i: (0, i))

    def resident_spec(rows, cols):
        # Constant block index -> weight/bias stays resident in VMEM across steps.
        return pl.BlockSpec((rows, cols), lambda i: (0, 0))

    outT = pl.pallas_call(
        search_kernel,
        out_shape=jax.ShapeDtypeStruct((noutput, B), jnp.float32),
        grid=(n_tiles,),
        in_specs=[
            stream_spec(ninput),                 # zT
            resident_spec(h1, ninput),           # w1
            resident_spec(h1, 1),                # b1
            resident_spec(h2, h1),               # w2
            resident_spec(h2, 1),                # b2
            resident_spec(noutput, h2),          # wf
            resident_spec(noutput, 1),           # bf
            stream_spec(1),                      # delta_zT
        ],
        out_specs=stream_spec(noutput),
        compiler_params=pltpu.CompilerParams(
            dimension_semantics=("parallel",)),  # megacore sharding on v7x
        cost_estimate=cost,
    )(zT, w1, b1, w2, b2, wf, bf, dzT)

    return outT.T                                # [B, noutput]


def init_params(key, ninput, layers, noutput):
    """Deterministic init mimicking nn.Linear default (uniform +/- 1/sqrt(fan_in)).

    Weights stored as [out, in] (PyTorch layout) so the kernel computes W @ zT.
    """
    layer_sizes = [ninput] + [int(x) for x in layers.split("-")]
    sizes = list(zip(layer_sizes[:-1], layer_sizes[1:])) + [(layer_sizes[-1], noutput)]
    names = [("w1", "b1"), ("w2", "b2"), ("wf", "bf")]
    params = {}
    for (fan_in, fan_out), (wn, bn) in zip(sizes, names):
        key, kw, kb = jax.random.split(key, 3)
        bound = 1.0 / jnp.sqrt(fan_in)
        params[wn] = jax.random.uniform(kw, (fan_out, fan_in), jnp.float32,
                                        -bound, bound)
        params[bn] = jax.random.uniform(kb, (fan_out, 1), jnp.float32,
                                        -bound, bound)
    return params


def reference_forward(z, params, delta_z):
    h = jnp.maximum(z @ params["w1"].T + params["b1"][:, 0], 0.0)
    h = jnp.maximum(h @ params["w2"].T + params["b2"][:, 0], 0.0)
    out = h @ params["wf"].T + params["bf"][:, 0]
    qn = jnp.sqrt(jnp.sum(out * out, axis=1, keepdims=True))
    return delta_z * (out / qn)


if __name__ == "__main__":
    # Small shapes consistent with the module: ninput=32, layers="64-32", noutput=16
    ninput, noutput = 32, 16
    layers = "64-32"

    key = jax.random.PRNGKey(0)
    key, kz, kd = jax.random.split(key, 3)
    params = init_params(key, ninput, layers, noutput)

    # --- small demo batch (single-block path, no padding) ---
    batch = 8
    z = jax.random.normal(kz, (batch, ninput), jnp.float32)
    delta_z = jax.random.uniform(kd, (batch, 1), jnp.float32, 0.5, 1.5)
    # TODO(synk): `sent` is unused in the PyTorch forward (embedding/LSTM dead code), so it is omitted.

    out = search_forward(z, params, delta_z)
    out = jax.block_until_ready(out)
    ref = reference_forward(z, params, delta_z)
    assert out.shape == (batch, noutput)
    assert jnp.allclose(out, ref, atol=1e-5, rtol=1e-5)

    # --- larger batch to exercise the multi-tile streamed/parallel grid path ---
    key, kz2, kd2 = jax.random.split(key, 3)
    big_batch = 2048
    z_big = jax.random.normal(kz2, (big_batch, ninput), jnp.float32)
    dz_big = jax.random.uniform(kd2, (big_batch, 1), jnp.float32, 0.5, 1.5)

    out_big = search_forward(z_big, params, dz_big, tile_b=4096)  # -> 2 tiles of 1024
    out_big = jax.block_until_ready(out_big)
    ref_big = reference_forward(z_big, params, dz_big)
    assert out_big.shape == (big_batch, noutput)
    assert jnp.allclose(out_big, ref_big, atol=1e-5, rtol=1e-5)

    print("KERNEL_OK")
</pallas_src>

<mosaic_0001>
module attributes {stable_mosaic.version = 11 : i64} {
  func.func @search_kernel(%arg0: i32, %arg1: memref<32x8xf32, #tpu.memory_space<vmem>>, %arg2: memref<64x32xf32, #tpu.memory_space<vmem>>, %arg3: memref<64x1xf32, #tpu.memory_space<vmem>>, %arg4: memref<32x64xf32, #tpu.memory_space<vmem>>, %arg5: memref<32x1xf32, #tpu.memory_space<vmem>>, %arg6: memref<16x32xf32, #tpu.memory_space<vmem>>, %arg7: memref<16x1xf32, #tpu.memory_space<vmem>>, %arg8: memref<1x8xf32, #tpu.memory_space<vmem>>, %arg9: memref<16x8xf32, #tpu.memory_space<vmem>>) attributes {dimension_semantics = [#tpu.dimension_semantics<parallel>], iteration_bounds = array<i64: 1>, scalar_prefetch = 0 : i64, scratch_operands = 0 : i64, tpu.core_type = #tpu.core_type<tc>, window_params = [{transform_indices = @transform_0, window_bounds = array<i64: 32, 8>}, {pipeline_mode = #tpu.pipeline_mode<synchronous>, transform_indices = @transform_1, window_bounds = array<i64: 64, 32>}, {pipeline_mode = #tpu.pipeline_mode<synchronous>, transform_indices = @transform_2, window_bounds = array<i64: 64, 1>}, {pipeline_mode = #tpu.pipeline_mode<synchronous>, transform_indices = @transform_3, window_bounds = array<i64: 32, 64>}, {pipeline_mode = #tpu.pipeline_mode<synchronous>, transform_indices = @transform_4, window_bounds = array<i64: 32, 1>}, {pipeline_mode = #tpu.pipeline_mode<synchronous>, transform_indices = @transform_5, window_bounds = array<i64: 16, 32>}, {pipeline_mode = #tpu.pipeline_mode<synchronous>, transform_indices = @transform_6, window_bounds = array<i64: 16, 1>}, {transform_indices = @transform_7, window_bounds = array<i64: 1, 8>}, {transform_indices = @transform_8, window_bounds = array<i64: 16, 8>}]} {
    %c0 = arith.constant 0 : index
    %c0_0 = arith.constant 0 : index
    %0 = vector.load %arg1[%c0, %c0_0] : memref<32x8xf32, #tpu.memory_space<vmem>>, vector<32x8xf32>
    %c0_1 = arith.constant 0 : index
    %c0_2 = arith.constant 0 : index
    %1 = vector.load %arg2[%c0_1, %c0_2] : memref<64x32xf32, #tpu.memory_space<vmem>>, vector<64x32xf32>
    %cst = arith.constant dense<0.000000e+00> : vector<64x8xf32>
    %2 = tpu.matmul %1, %0, %cst {dimension_numbers = #tpu.dot_dimension_numbers<[1], [0], [0], [1], [0, 0, 1, 1], [], []>} : vector<64x32xf32>, vector<32x8xf32>, vector<64x8xf32> -> vector<64x8xf32>
    %c0_3 = arith.constant 0 : index
    %c0_4 = arith.constant 0 : index
    %3 = vector.load %arg3[%c0_3, %c0_4] : memref<64x1xf32, #tpu.memory_space<vmem>>, vector<64x1xf32>
    %4 = vector.broadcast %3 : vector<64x1xf32> to vector<64x8xf32>
    %5 = arith.addf %2, %4 : vector<64x8xf32>
    %cst_5 = arith.constant 0.000000e+00 : f32
    %6 = vector.broadcast %cst_5 : f32 to vector<64x8xf32>
    %7 = arith.maximumf %5, %6 : vector<64x8xf32>
    %c0_6 = arith.constant 0 : index
    %c0_7 = arith.constant 0 : index
    %8 = vector.load %arg4[%c0_6, %c0_7] : memref<32x64xf32, #tpu.memory_space<vmem>>, vector<32x64xf32>
    %cst_8 = arith.constant dense<0.000000e+00> : vector<32x8xf32>
    %9 = tpu.matmul %8, %7, %cst_8 {dimension_numbers = #tpu.dot_dimension_numbers<[1], [0], [0], [1], [0, 0, 1, 1], [], []>} : vector<32x64xf32>, vector<64x8xf32>, vector<32x8xf32> -> vector<32x8xf32>
    %c0_9 = arith.constant 0 : index
    %c0_10 = arith.constant 0 : index
    %10 = vector.load %arg5[%c0_9, %c0_10] : memref<32x1xf32, #tpu.memory_space<vmem>>, vector<32x1xf32>
    %11 = vector.broadcast %10 : vector<32x1xf32> to vector<32x8xf32>
    %12 = arith.addf %9, %11 : vector<32x8xf32>
    %cst_11 = arith.constant 0.000000e+00 : f32
    %13 = vector.broadcast %cst_11 : f32 to vector<32x8xf32>
    %14 = arith.maximumf %12, %13 : vector<32x8xf32>
    %c0_12 = arith.constant 0 : index
    %c0_13 = arith.constant 0 : index
    %15 = vector.load %arg6[%c0_12, %c0_13] : memref<16x32xf32, #tpu.memory_space<vmem>>, vector<16x32xf32>
    %cst_14 = arith.constant dense<0.000000e+00> : vector<16x8xf32>
    %16 = tpu.matmul %15, %14, %cst_14 {dimension_numbers = #tpu.dot_dimension_numbers<[1], [0], [0], [1], [0, 0, 1, 1], [], []>} : vector<16x32xf32>, vector<32x8xf32>, vector<16x8xf32> -> vector<16x8xf32>
    %c0_15 = arith.constant 0 : index
    %c0_16 = arith.constant 0 : index
    %17 = vector.load %arg7[%c0_15, %c0_16] : memref<16x1xf32, #tpu.memory_space<vmem>>, vector<16x1xf32>
    %18 = vector.broadcast %17 : vector<16x1xf32> to vector<16x8xf32>
    %19 = arith.addf %16, %18 : vector<16x8xf32>
    %20 = arith.mulf %19, %19 : vector<16x8xf32>
    %cst_17 = arith.constant dense<0.000000e+00> : vector<8xf32>
    %21 = vector.multi_reduction <add>, %20, %cst_17 [0] : vector<16x8xf32> to vector<8xf32>
    %22 = vector.shape_cast %21 : vector<8xf32> to vector<1x8xf32>
    %23 = math.rsqrt %22 : vector<1x8xf32>
    %c0_18 = arith.constant 0 : index
    %c0_19 = arith.constant 0 : index
    %24 = vector.load %arg8[%c0_18, %c0_19] : memref<1x8xf32, #tpu.memory_space<vmem>>, vector<1x8xf32>
    %25 = arith.mulf %24, %23 : vector<1x8xf32>
    %26 = vector.broadcast %25 : vector<1x8xf32> to vector<16x8xf32>
    %27 = arith.mulf %19, %26 : vector<16x8xf32>
    %c0_20 = arith.constant 0 : index
    %c0_21 = arith.constant 0 : index
    %28 = vector.load %arg9[%c0_20, %c0_21] : memref<16x8xf32, #tpu.memory_space<vmem>>, vector<16x8xf32>
    tpu.vector_store %arg9[%c0_20, %c0_21], %27 {strides = array<i32>} : memref<16x8xf32, #tpu.memory_space<vmem>>, vector<16x8xf32>,
    return
  }
  func.func @transform_0(%arg0: i32) -> (i32, i32) {
    %c0_i32 = arith.constant 0 : i32
    %c0_i32_0 = arith.constant 0 : i32
    return %c0_i32, %arg0 : i32, i32
  }
  func.func @transform_1(%arg0: i32) -> (i32, i32) {
    %c0_i32 = arith.constant 0 : i32
    %c0_i32_0 = arith.constant 0 : i32
    %c0_i32_1 = arith.constant 0 : i32
    return %c0_i32, %c0_i32_0 : i32, i32
  }
  func.func @transform_2(%arg0: i32) -> (i32, i32) {
    %c0_i32 = arith.constant 0 : i32
    %c0_i32_0 = arith.constant 0 : i32
    %c0_i32_1 = arith.constant 0 : i32
    return %c0_i32, %c0_i32_0 : i32, i32
  }
  func.func @transform_3(%arg0: i32) -> (i32, i32) {
    %c0_i32 = arith.constant 0 : i32
    %c0_i32_0 = arith.constant 0 : i32
    %c0_i32_1 = arith.constant 0 : i32
    return %c0_i32, %c0_i32_0 : i32, i32
  }
  func.func @transform_4(%arg0: i32) -> (i32, i32) {
    %c0_i32 = arith.constant 0 : i32
    %c0_i32_0 = arith.constant 0 : i32
    %c0_i32_1 = arith.constant 0 : i32
    return %c0_i32, %c0_i32_0 : i32, i32
  }
  func.func @transform_5(%arg0: i32) -> (i32, i32) {
    %c0_i32 = arith.constant 0 : i32
    %c0_i32_0 = arith.constant 0 : i32
    %c0_i32_1 = arith.constant 0 : i32
    return %c0_i32, %c0_i32_0 : i32, i32
  }
  func.func @transform_6(%arg0: i32) -> (i32, i32) {
    %c0_i32 = arith.constant 0 : i32
    %c0_i32_0 = arith.constant 0 : i32
    %c0_i32_1 = arith.constant 0 : i32
    return %c0_i32, %c0_i32_0 : i32, i32
  }
  func.func @transform_7(%arg0: i32) -> (i32, i32) {
    %c0_i32 = arith.constant 0 : i32
    %c0_i32_0 = arith.constant 0 : i32
    return %c0_i32, %arg0 : i32, i32
  }
  func.func @transform_8(%arg0: i32) -> (i32, i32) {
    %c0_i32 = arith.constant 0 : i32
    %c0_i32_0 = arith.constant 0 : i32
    return %c0_i32, %arg0 : i32, i32
  }
}

</mosaic_0001>

<bundles_post_ra>
// kernel: tpu_custom_call.1
= control target key start
LH: loop header
LB: loop body
LE: loop exit
PB: predicated region body
PF: predicated region fallthrough
CT: control target
= control target key end

     0   :  { %vm89_vm0 = vcmask 261120   ;;  %v615_v3 = vmov 0   ;;  %vm255_vm1 = vcmask 523264   ;;  %vm454_vm2 = vcmask 64512   ;;  %s784_s0 = inlined_call_operand.vmem [shape: f32[32,8], index: 0, kind: input, shape index: {}]   ;;  %s785_s1 = inlined_call_operand.vmem [shape: f32[64,32], index: 1, kind: input, shape index: {}]   ;;  %s786_s2 = inlined_call_operand.vmem [shape: f32[64,1], index: 2, kind: input, shape index: {}]   ;;  %s787_s4 = inlined_call_operand.vmem [shape: f32[32,1], index: 4, kind: input, shape index: {}]   ;;  %s788_s6 = inlined_call_operand.vmem [shape: f32[16,1], index: 6, kind: input, shape index: {}]   ;;  %s789_s3 = inlined_call_operand.vmem [shape: f32[32,64], index: 3, kind: input, shape index: {}]   ;;  %s790_s5 = inlined_call_operand.vmem [shape: f32[16,32], index: 5, kind: input, shape index: {}]   ;;  %s791_s7 = inlined_call_operand.vmem [shape: f32[1,8], index: 7, kind: input, shape index: {}]   ;;  %s792_s8 = inlined_call_operand.vmem [shape: f32[16,8], index: 8, kind: output, shape index: {}]  }
   0x1   :  { %v29_v0 = vld [vmem:[%s784_s0] sm:$0xff]  ;;  %v30_v1 = vld [vmem:[%s784_s0 + $0x8] sm:$0xff]  ;;  %v31_v2 = vld [vmem:[%s784_s0 + $0x10] sm:$0xff]  ;;  %611 = vset.pattern.permute.xlu0 %v615_v3  ;;  %612 = vset.pattern.permute.xlu1 %v615_v3 }
   0x2   :  { %v578_v4 = vpack.c.bf16 %v30_v1, %v29_v0  ;;  %v32_v5 = vld [vmem:[%s784_s0 + $0x18] sm:$0xff]  ;;  %v33_v6 = vld [vmem:[%s785_s1] sm:$0xff]  ;;  %v43_v9 = vld [vmem:[%s786_s2 + $0x10] sm:$0xff] }
   0x3   :  { %v582_v7 = vpack.c.bf16 %v32_v5, %v31_v2  ;;  %533 = vmatprep.mubr.msk.f32.mxu0 %vm89_vm0, %v33_v6  ;;  %v41_v8 = vld [vmem:[%s786_s2] sm:$0xff]  ;;  %61 = vperm.xlu1 %612, %v43_v9   ;;  %v42_v10 = vld [vmem:[%s786_s2 + $0x8] sm:$0xff]  ;;  %v44_v11 = vld [vmem:[%s786_s2 + $0x18] sm:$0xff] }
   0x4   :  { %579 = vmatprep.subr.bf16.mxu0 %v578_v4  ;;  %51 = vperm.xlu0 %611, %v41_v8   ;;  %v34_v12 = vld [vmem:[%s785_s1 + $0x8] sm:$0xff]  ;;  %v35_v13 = vld [vmem:[%s785_s1 + $0x10] sm:$0xff]  ;;  %v45_v14 = vld [vmem:[%s786_s2 + $0x20] sm:$0xff] }
   0x5   :  { %581 = vmatpush3.bf16.msra.mxu0 %v578_v4  ;;  %v46_v15 = vld [vmem:[%s786_s2 + $0x28] sm:$0xff]  ;;  %v36_v16 = vld [vmem:[%s785_s1 + $0x18] sm:$0xff]  ;;  %v37_v17 = vld [vmem:[%s785_s1 + $0x20] sm:$0xff] }
   0x6   :  { %583 = vmatprep.subr.bf16.mxu0 %v582_v7  ;;  %v47_v18 = vld [vmem:[%s786_s2 + $0x30] sm:$0xff]  ;;  %v48_v19 = vld [vmem:[%s786_s2 + $0x38] sm:$0xff]  ;;  %v38_v20 = vld [vmem:[%s785_s1 + $0x28] sm:$0xff] }
   0x7   :  { %66 = vperm.xlu1 %612, %v44_v11   ;;  %v39_v21 = vld [vmem:[%s785_s1 + $0x30] sm:$0xff]  ;;  %v231_v22 = vld [vmem:[%s787_s4] sm:$0xff]  ;;  %v232_v23 = vld [vmem:[%s787_s4 + $0x8] sm:$0xff] }
   0x8   :  { %56 = vperm.xlu0 %611, %v42_v10   ;;  %v40_v24 = vld [vmem:[%s785_s1 + $0x38] sm:$0xff]  ;;  %v233_v25 = vld [vmem:[%s787_s4 + $0x10] sm:$0xff]  ;;  %v359_v27 = vld [vmem:[%s788_s6] sm:$0xff] }
   0x9   :  { %585 = vmatpush3.bf16.msra.mxu0 %v582_v7  ;;  %v234_v26 = vld [vmem:[%s787_s4 + $0x18] sm:$0xff]  ;;  %v360_v28 = vld [vmem:[%s788_s6 + $0x8] sm:$0xff]  ;;  %v227_v29 = vld [vmem:[%s789_s3] sm:$0xff] }
   0xa   :  { %561 = vmatprep.mubr.msk.f32.mxu1 %vm255_vm1, %v227_v29  ;;  %v228_v2 = vld [vmem:[%s789_s3 + $0x8] sm:$0xff]  ;;  %v229_v3 = vld [vmem:[%s789_s3 + $0x10] sm:$0xff]  ;;  %v230_v4 = vld [vmem:[%s789_s3 + $0x18] sm:$0xff] }
   0xb   :  { %76 = vperm.xlu1 %612, %v46_v15   ;;  %v357_v5 = vld [vmem:[%s790_s5] sm:$0xff] }
   0xc   :  { %534 = vmatmul.mubr.msk.f32.vlgmr.msra.gmra.mrb[0].mxu0 %vm89_vm0, %v34_v12  ;;  %71 = vperm.xlu0 %611, %v45_v14  }
   0xd   :  { %536 = vmatprep.mubr.msk.f32.mxu0 %vm89_vm0, %v35_v13 }
   0xf   :  { %86 = vperm.xlu1 %612, %v48_v19  }
  0x10   :  { %537 = vmatmul.mubr.msk.f32.gmra.mrb[2].mxu0 %vm89_vm0, %v36_v16  ;;  %81 = vperm.xlu0 %611, %v47_v18  }
  0x11   :  { %539 = vmatprep.mubr.msk.f32.mxu0 %vm89_vm0, %v37_v17 }
  0x13   :  { %242 = vperm.xlu1 %612, %v232_v23  }
  0x14   :  { %540 = vmatmul.mubr.msk.f32.gmra.mrb[4].mxu0 %vm89_vm0, %v38_v20  ;;  %237 = vperm.xlu0 %611, %v231_v22  }
  0x15   :  { %542 = vmatprep.mubr.msk.f32.mxu0 %vm89_vm0, %v39_v21 }
  0x17   :  { %252 = vperm.xlu1 %612, %v234_v26  }
  0x18   :  { %543 = vmatmul.mubr.msk.f32.gmra.mrb[6].mxu0 %vm89_vm0, %v40_v24  ;;  %247 = vperm.xlu0 %611, %v233_v25   ;;  %v358_v24 = vld [vmem:[%s790_s5 + $0x8] sm:$0xff] }
  0x19   :  { %575 = vmatprep.mubr.msk.f32.mxu0 %vm89_vm0, %v357_v5 }
  0x1b   :  { %368 = vperm.xlu1 %612, %v360_v28  }
  0x1c   :  { %363 = vperm.xlu0 %611, %v359_v27  }
  0x82   :  { %v62_v31 = vpop.permute.xlu1 %61 }
  0x83   :  { %v52_v30 = vpop.permute.xlu0 %51 }
  0x86   :  { %v67_v33 = vpop.permute.xlu1 %66 }
  0x87   :  { %v57_v32 = vpop.permute.xlu0 %56 }
  0x8a   :  { %v77_v43 = vpop.permute.xlu1 %76 }
  0x8b   :  { %v72_v46 = vpop.permute.xlu0 %71 }
  0x8e   :  { %v87_v55 = vpop.permute.xlu1 %86 }
  0x8f   :  { %v82_v58 = vpop.permute.xlu0 %81 }
  0x92   :  { %v243_v6 = vpop.permute.xlu1 %242 }
  0x93   :  { %v238_v7 = vpop.permute.xlu0 %237 }
  0x96   :  { %v253_v13 = vpop.permute.xlu1 %252 }
  0x97   :  { %v248_v16 = vpop.permute.xlu0 %247 }
  0x9a   :  { %v369_v25 = vpop.permute.xlu1 %368 }
  0x9b   :  { %v364_v27 = vpop.permute.xlu0 %363 }
  0xdf   :  { %v535_v34 = vpop.f32.mrb[0].mxu0 }
  0xe0   :  { %v186_v35 = vadd.f32 %v535_v34, %v57_v32  ;;  %v180_v36 = vpop.f32.mrb[1].mxu0 }
  0xe1   :  { %v181_v37 = vadd.f32 %v180_v36, %v52_v30 }
  0xe2   :  { %v220_v38 = vmax.f32 %v186_v35, 0.0 }
  0xe3   :  { %v219_v39 = vmax.f32 %v181_v37, 0.0  ;;  %v538_v40 = vpop.f32.mrb[2].mxu0 }
  0xe4   :  { %v196_v41 = vadd.f32 %v538_v40, %v67_v33  ;;  %v190_v42 = vpop.f32.mrb[3].mxu0 }
  0xe5   :  { %v191_v44 = vadd.f32 %v190_v42, %v62_v31  ;;  %v586_v45 = vpack.c.bf16 %v220_v38, %v219_v39  ;;  %v468_v42 = vlaneseq }
  0xe6   :  { %v222_v47 = vmax.f32 %v196_v41, 0.0 }
  0xe7   :  { %v221_v48 = vmax.f32 %v191_v44, 0.0  ;;  %v541_v49 = vpop.f32.mrb[4].mxu0  ;;  %587 = vmatprep.subr.bf16.mxu1 %v586_v45  ;;  %v465_v44 = vld [vmem:[%s791_s7] sm:$0x1] }
  0xe8   :  { %v206_v50 = vadd.f32 %v541_v49, %v77_v43  ;;  %v200_v51 = vpop.f32.mrb[5].mxu0  ;;  %589 = vmatpush3.bf16.msra.mxu1 %v586_v45  ;;  %v469_v43 = vshrl.u32 %v468_v42, 7 }
  0xe9   :  { %v590_v52 = vpack.c.bf16 %v222_v47, %v221_v48  ;;  %v201_v53 = vadd.f32 %v200_v51, %v72_v46 }
  0xea   :  { %v224_v54 = vmax.f32 %v206_v50, 0.0  ;;  %v470_v45 = vsub.s32 0, %v469_v43 }
  0xeb   :  { %v223_v56 = vmax.f32 %v201_v53, 0.0  ;;  %v544_v57 = vpop.f32.mrb[6].mxu0  ;;  %591 = vmatprep.subr.bf16.mxu1 %v590_v52 }
  0xec   :  { %v216_v59 = vadd.f32 %v544_v57, %v87_v55  ;;  %v210_v60 = vpop.f32.mrb[7].mxu0  ;;  %593 = vmatpush3.bf16.msra.mxu1 %v590_v52 }
  0xed   :  { %v594_v61 = vpack.c.bf16 %v224_v54, %v223_v56  ;;  %v211_v62 = vadd.f32 %v210_v60, %v82_v58 }
  0xee   :  { %v226_v63 = vmax.f32 %v216_v59, 0.0 }
  0xef   :  { %v225_v0 = vmax.f32 %v211_v62, 0.0  ;;  %595 = vmatprep.subr.bf16.mxu1 %v594_v61 }
  0xf0   :  { %597 = vmatpush3.bf16.msra.mxu1 %v594_v61 }
  0xf1   :  { %v598_v1 = vpack.c.bf16 %v226_v63, %v225_v0 }
  0xf3   :  { %599 = vmatprep.subr.bf16.mxu1 %v598_v1 }
  0xf4   :  { %601 = vmatpush3.bf16.msra.mxu1 %v598_v1 }
  0xf7   :  { %562 = vmatmul.mubr.msk.f32.vlgmr.msra.gmra.mrb[0].mxu1 %vm255_vm1, %v228_v2 }
  0xf8   :  { %564 = vmatprep.mubr.msk.f32.mxu1 %vm255_vm1, %v229_v3 }
  0xfb   :  { %565 = vmatmul.mubr.msk.f32.gmra.mrb[2].mxu1 %vm255_vm1, %v230_v4 }
 0x1ca   :  { %v563_v8 = vpop.f32.mrb[0].mxu1 }
 0x1cb   :  { %v340_v9 = vadd.f32 %v563_v8, %v243_v6  ;;  %v334_v10 = vpop.f32.mrb[1].mxu1 }
 0x1cc   :  { %v335_v11 = vadd.f32 %v334_v10, %v238_v7 }
 0x1cd   :  { %v354_v12 = vmax.f32 %v340_v9, 0.0 }
 0x1ce   :  { %v353_v14 = vmax.f32 %v335_v11, 0.0  ;;  %v566_v15 = vpop.f32.mrb[2].mxu1 }
 0x1cf   :  { %v350_v17 = vadd.f32 %v566_v15, %v253_v13  ;;  %v344_v18 = vpop.f32.mrb[3].mxu1 }
 0x1d0   :  { %v602_v19 = vpack.c.bf16 %v354_v12, %v353_v14  ;;  %v345_v20 = vadd.f32 %v344_v18, %v248_v16 }
 0x1d1   :  { %v356_v21 = vmax.f32 %v350_v17, 0.0 }
 0x1d2   :  { %v355_v22 = vmax.f32 %v345_v20, 0.0  ;;  %603 = vmatprep.subr.bf16.mxu0 %v602_v19 }
 0x1d3   :  { %605 = vmatpush3.bf16.msra.mxu0 %v602_v19 }
 0x1d4   :  { %v606_v23 = vpack.c.bf16 %v356_v21, %v355_v22 }
 0x1d6   :  { %607 = vmatprep.subr.bf16.mxu0 %v606_v23 }
 0x1d7   :  { %609 = vmatpush3.bf16.msra.mxu0 %v606_v23 }
 0x1da   :  { %576 = vmatmul.mubr.msk.f32.vlgmr.msra.gmra.mrb[8].mxu0 %vm89_vm0, %v358_v24 }
 0x2ad   :  { %v577_v26 = vpop.f32.mrb[8].mxu0 }
 0x2ae   :  { %v449_v28 = vadd.f32 %v577_v26, %v369_v25  ;;  %v443_v29 = vpop.f32.mrb[9].mxu0 }
 0x2af   :  { %v444_v30 = vadd.f32 %v443_v29, %v364_v27 }
 0x2b0   :  { %v453_v31 = vmul.f32 %v449_v28, %v449_v28 }
 0x2b1   :  { %v452_v32 = vmul.f32 %v444_v30, %v444_v30 }
 0x2b2   :  { %v456_v33 = vsel %vm454_vm2, %v453_v31, 0.0 }
 0x2b3   :  { %v455_v34 = vsel %vm454_vm2, %v452_v32, 0.0 }
 0x2b4   :  { %v457_v35 = vadd.f32 %v456_v33, %v455_v34 }
 0x2b6   :  { %v458_v36 = vrot.slane %v457_v35, 4 }
 0x2b8   :  { %v459_v37 = vadd.f32 %v458_v36, %v457_v35 }
 0x2ba   :  { %v460_v38 = vrot.slane %v459_v37, 2 }
 0x2bc   :  { %v461_v39 = vadd.f32 %v460_v38, %v459_v37 }
 0x2be   :  { %v462_v40 = vrot.slane %v461_v39, 1 }
 0x2c0   :  { %v463_v41 = vadd.f32 %v462_v40, %v461_v39 }
 0x2c2   :  { %613 = vrsqrt.f32 %v463_v41 }
 0x2cc   :  { %v614_v46 = vpop.eup %613 }
 0x2cd   :  { %v466_v47 = vmul.f32 %v614_v46, %v465_v44 }
 0x2cf   :  { %v471_v48 = vrot.slane %v466_v47, %v470_v45 }
 0x2d1   :  { %v473_v49 = vmul.f32 %v471_v48, %v444_v30  ;;  %v474_v50 = vmul.f32 %v471_v48, %v449_v28 }
 0x2d3   :  { %475 = vst.msk [vmem:[%s792_s8] sm:$0xff] %vm454_vm2, %v473_v49  ;;  %476 = vst.msk [vmem:[%s792_s8 + $0x8] sm:$0xff] %vm454_vm2, %v474_v50 }

</bundles_post_ra>
